<compile_context>
chip_gen: v6e
topology: v6e:2x2x1
jax: 0.10.0
libtpu: 0.0.40
codegen_flags: <defaults>
</compile_context>

<pallas_src>
import jax
import jax.numpy as jnp
import numpy as np
from jax.experimental import pallas as pl
from jax.experimental.pallas import tpu as pltpu


# ------------------------------ small helpers ------------------------------ #

def _round_up(x, m):
    return (x + m - 1) // m * m


def _pad_vec(v, n):
    return jnp.pad(v, (0, n - v.shape[0]))


def _fold_bn(gamma, beta, mean, var, eps=1e-5):
    scale = gamma / jnp.sqrt(var + eps)
    shift = beta - mean * scale
    return scale, shift


def _weight_to_mat(w_oihw):
    """OIHW conv weight -> (kh*kw*Cin, Cout) matrix (tap-major, chan-minor)."""
    cout = w_oihw.shape[0]
    return jnp.transpose(w_oihw, (2, 3, 1, 0)).reshape(-1, cout)


def _im2col(x_nhwc, kh, kw, stride, pad):
    """Patch matrix (N*Ho*Wo, kh*kw*C) in x's dtype, plus (N, Ho, Wo)."""
    n, h, w, c = x_nhwc.shape
    xp = jnp.pad(x_nhwc, ((0, 0), (pad, pad), (pad, pad), (0, 0)))
    ho = (h + 2 * pad - kh) // stride + 1
    wo = (w + 2 * pad - kw) // stride + 1
    taps = []
    for i in range(kh):
        for j in range(kw):
            taps.append(xp[:, i:i + stride * ho:stride, j:j + stride * wo:stride, :])
    p = jnp.stack(taps, axis=3)                       # (N, Ho, Wo, kh*kw, C)
    return p.reshape(n * ho * wo, kh * kw * c), (n, ho, wo)


def _pick_m_tile(m):
    """M tile: minimal padding, multiple of 16 (bf16 sublanes), and split so
    that >=2 parallel grid points exist when possible (v7x: 2 TensorCores)."""
    if m <= 512:
        tm = _round_up(m, 16)
    else:
        tm = min((512, 384, 256, 128), key=lambda t: _round_up(m, t))
    while _round_up(m, tm) // tm < 2 and tm % 32 == 0 and tm > 16:
        tm //= 2
    return tm, _round_up(m, tm)


_VMEM_LIMIT = 32 * 1024 * 1024     # well under v7x's 64 MiB physical VMEM


# ----------------------- stage 1: packed conv GEMM ------------------------- #
# One GEMM computes conv3 / conv5 / residual_conv at once (3x3 kernels are
# embedded in 5x5 taps); output columns are the packed lane-dense bf16 slab
# [out3 | out5 | res | 0pad].

def _stage1_kernel(a_ref, w_ref, b_ref, o_ref):
    acc = jnp.dot(a_ref[...], w_ref[...], preferred_element_type=jnp.float32)
    o_ref[...] = (acc + b_ref[...]).astype(o_ref.dtype)


def _stage1_gemm(patches, w1, b1):
    m, k = patches.shape
    ns = w1.shape[1]
    tm, mp = _pick_m_tile(m)
    if mp > m:
        patches = jnp.pad(patches, ((0, mp - m), (0, 0)))
    out = pl.pallas_call(
        _stage1_kernel,
        out_shape=jax.ShapeDtypeStruct((mp, ns), jnp.bfloat16),
        grid=(mp // tm,),
        in_specs=[
            pl.BlockSpec((tm, k), lambda i: (i, 0)),     # patches (K whole)
            pl.BlockSpec((k, ns), lambda i: (0, 0)),     # packed weights
            pl.BlockSpec((1, ns), lambda i: (0, 0)),     # packed bias
        ],
        out_specs=pl.BlockSpec((tm, ns), lambda i: (i, 0)),
        compiler_params=pltpu.CompilerParams(
            dimension_semantics=("parallel",),
            vmem_limit_bytes=_VMEM_LIMIT),
    )(patches, w1, b1)
    return out[:m]


# --------------- stage 2: direct 3x3 conv + BN + add + ReLU ---------------- #
# grid = (batch, out_row, tap_row); tap_row is the reduction ("arbitrary").
# Each step loads ONE padded input row (the tap-row offset is expressed in the
# index_map as `oh + ki`), runs the 3 tap columns as static slices + MXU
# matmuls into a f32 VMEM accumulator, and the last tap step applies
#   relu( conv*s1 + o1 + res*s2 + o2 ).

def _fuse_conv_kernel(x_ref, w_ref, r_ref, bn_ref, o_ref, acc_ref):
    ki = pl.program_id(2)
    wo, npo = acc_ref.shape

    @pl.when(ki == 0)
    def _():
        acc_ref[...] = jnp.zeros_like(acc_ref)

    x = x_ref[...].reshape(x_ref.shape[2], x_ref.shape[3])   # (wo+2, ns) bf16
    part = jnp.zeros((wo, npo), jnp.float32)
    for kj in range(3):                                      # static tap cols
        part += jnp.dot(x[kj:kj + wo, :], w_ref[ki * 3 + kj],
                        preferred_element_type=jnp.float32)
    acc_ref[...] += part

    @pl.when(ki == pl.num_programs(2) - 1)
    def _():
        bn = bn_ref[...]                                     # (4, npo) f32
        s1, o1, s2, o2 = bn[0:1, :], bn[1:2, :], bn[2:3, :], bn[3:4, :]
        r = r_ref[...].reshape(wo, npo).astype(jnp.float32)
        out = acc_ref[...] * s1 + o1 + r * s2 + o2
        o_ref[...] = jnp.maximum(out, 0.0).astype(o_ref.dtype).reshape(o_ref.shape)


def _fuse_conv(xp, w2, res, bnv):
    n, hp, wp, ns = xp.shape
    ho, wo = hp - 2, wp - 2
    npo = w2.shape[-1]
    return pl.pallas_call(
        _fuse_conv_kernel,
        out_shape=jax.ShapeDtypeStruct((n, ho, wo, npo), jnp.float32),
        grid=(n, ho, 3),
        in_specs=[
            # one padded input row, shifted by the tap row index
            pl.BlockSpec((1, 1, wp, ns), lambda b, oh, ki: (b, oh + ki, 0, 0)),
            # full weight stack stays resident in VMEM (constant block index)
            pl.BlockSpec((9, ns, npo), lambda b, oh, ki: (0, 0, 0)),
            # residual row (raw residual_conv output), bf16
            pl.BlockSpec((1, 1, wo, npo), lambda b, oh, ki: (b, oh, 0, 0)),
            # merged BN vectors [s1, o1, s2, o2]
            pl.BlockSpec((4, npo), lambda b, oh, ki: (0, 0)),
        ],
        out_specs=pl.BlockSpec((1, 1, wo, npo), lambda b, oh, ki: (b, oh, 0, 0)),
        scratch_shapes=[pltpu.VMEM((wo, npo), jnp.float32)],
        compiler_params=pltpu.CompilerParams(
            dimension_semantics=("parallel", "parallel", "arbitrary"),
            vmem_limit_bytes=_VMEM_LIMIT),
    )(xp, w2, res, bnv)


# --------------------------- DownUnit forward ------------------------------ #

@jax.jit
def down_unit_forward(x_nchw, params):
    x = jnp.transpose(x_nchw, (0, 2, 3, 1))            # NCHW -> NHWC
    cin = x.shape[-1]
    cout = params["w3"].shape[0]
    ns = _round_up(3 * cout, 128)                      # stage-1 packed slab
    npo = _round_up(cout, 128)                         # final channel slab

    # ---- stage-1 weights: 3x3 conv3 / residual embedded in 5x5 taps, packed
    #      into one lane-dense slab [out3 | out5 | res | 0pad] --------------
    w3_as5 = jnp.pad(params["w3"], ((0, 0), (0, 0), (1, 1), (1, 1)))
    wr_as5 = jnp.pad(params["wr"], ((0, 0), (0, 0), (1, 1), (1, 1)))
    w1 = jnp.zeros((25 * cin, ns), jnp.float32)
    w1 = w1.at[:, 0 * cout:1 * cout].set(_weight_to_mat(w3_as5))
    w1 = w1.at[:, 1 * cout:2 * cout].set(_weight_to_mat(params["w5"]))
    w1 = w1.at[:, 2 * cout:3 * cout].set(_weight_to_mat(wr_as5))
    w1 = w1.astype(jnp.bfloat16)
    b1 = jnp.zeros((1, ns), jnp.float32)
    b1 = b1.at[0, 0 * cout:1 * cout].set(params["b3"])
    b1 = b1.at[0, 1 * cout:2 * cout].set(params["b5"])   # residual: no bias

    # ---- stage 1: one bf16 im2col + one GEMM for conv3/conv5/residual ------
    patches1, (n, ho, wo) = _im2col(x.astype(jnp.bfloat16), 5, 5, stride=2, pad=2)
    out1 = _stage1_gemm(patches1, w1, b1)              # (n*ho*wo, ns) bf16

    slab = out1.reshape(n, ho, wo, ns)                 # [out3|out5|res|0] NHWC
    xp = jnp.pad(slab, ((0, 0), (1, 1), (1, 1), (0, 0)))   # spatial pad 1
    res = slab[..., 2 * cout:3 * cout]                 # raw residual conv out
    res = jnp.pad(res, ((0, 0), (0, 0), (0, 0), (0, npo - cout)))

    # ---- stage-2 weights: conv_fuse reads only the [out3|out5] columns -----
    # (rows >= 2*cout are zero, so the res/pad slab columns contribute 0).
    # TODO(synk): for large cout this inflates K by ns/round_up(2*cout,128).
    wf_t = jnp.transpose(params["wf"], (2, 3, 1, 0))   # (3,3,2*cout,cout)
    w2 = jnp.zeros((3, 3, ns, npo), jnp.float32)
    w2 = w2.at[:, :, :2 * cout, :cout].set(wf_t)
    w2 = w2.reshape(9, ns, npo).astype(jnp.bfloat16)

    s1, o1 = _fold_bn(params["bn_g"], params["bn_b"],
                      params["bn_m"], params["bn_v"])
    o1 = o1 + s1 * params["bf"]                        # fold conv_fuse bias
    s2, o2 = _fold_bn(params["rbn_g"], params["rbn_b"],
                      params["rbn_m"], params["rbn_v"])
    bnv = jnp.stack([_pad_vec(s1, npo), _pad_vec(o1, npo),
                     _pad_vec(s2, npo), _pad_vec(o2, npo)], axis=0)  # (4,npo)

    # ---- stage 2: direct conv + fused epilogue ------------------------------
    out = _fuse_conv(xp, w2, res, bnv)                 # (n, ho, wo, npo) f32
    out = out[..., :cout]
    return jnp.transpose(out, (0, 3, 1, 2))            # NHWC -> NCHW


# ------------------------------ reference ---------------------------------- #

def _conv_ref(x_nhwc, w_oihw, bias, stride, pad):
    w_hwio = jnp.transpose(w_oihw, (2, 3, 1, 0))
    out = jax.lax.conv_general_dilated(
        x_nhwc, w_hwio, window_strides=(stride, stride),
        padding=((pad, pad), (pad, pad)),
        dimension_numbers=("NHWC", "HWIO", "NHWC"),
        precision=jax.lax.Precision.HIGHEST)
    if bias is not None:
        out = out + bias
    return out


def down_unit_reference(x_nchw, params):
    x = jnp.transpose(x_nchw, (0, 2, 3, 1))
    out3 = _conv_ref(x, params["w3"], params["b3"], 2, 1)
    out5 = _conv_ref(x, params["w5"], params["b5"], 2, 2)
    cat = jnp.concatenate([out3, out5], axis=-1)
    fuse = _conv_ref(cat, params["wf"], params["bf"], 1, 1)
    res = _conv_ref(x, params["wr"], None, 2, 1)
    s1, o1 = _fold_bn(params["bn_g"], params["bn_b"], params["bn_m"], params["bn_v"])
    s2, o2 = _fold_bn(params["rbn_g"], params["rbn_b"], params["rbn_m"], params["rbn_v"])
    out = jnp.maximum(fuse * s1 + o1 + res * s2 + o2, 0.0)
    return jnp.transpose(out, (0, 3, 1, 2))


# --------------------------------- main ------------------------------------ #

def make_params(key, in_channels, out_channels):
    ks = jax.random.split(key, 12)
    f32 = jnp.float32
    return {
        "w3": 0.1 * jax.random.normal(ks[0], (out_channels, in_channels, 3, 3), f32),
        "b3": 0.05 * jax.random.normal(ks[1], (out_channels,), f32),
        "w5": 0.1 * jax.random.normal(ks[2], (out_channels, in_channels, 5, 5), f32),
        "b5": 0.05 * jax.random.normal(ks[3], (out_channels,), f32),
        "wf": 0.1 * jax.random.normal(ks[4], (out_channels, 2 * out_channels, 3, 3), f32),
        "bf": 0.05 * jax.random.normal(ks[5], (out_channels,), f32),
        "wr": 0.1 * jax.random.normal(ks[6], (out_channels, in_channels, 3, 3), f32),
        # BN after conv_fuse
        "bn_g": 1.0 + 0.1 * jax.random.normal(ks[7], (out_channels,), f32),
        "bn_b": 0.05 * jax.random.normal(ks[8], (out_channels,), f32),
        "bn_m": 0.02 * jax.random.normal(ks[9], (out_channels,), f32),
        "bn_v": 1.0 + 0.1 * jax.nn.sigmoid(jax.random.normal(ks[10], (out_channels,), f32)),
        # BN inside residual_conv
        "rbn_g": 1.0 + 0.1 * jax.random.normal(ks[11], (out_channels,), f32),
        "rbn_b": jnp.zeros((out_channels,), f32),
        "rbn_m": jnp.zeros((out_channels,), f32),
        "rbn_v": jnp.ones((out_channels,), f32),
    }


if __name__ == "__main__":
    key = jax.random.PRNGKey(0)
    k_x, k_p = jax.random.split(key)

    N, C_in, C_out, H, W = 2, 4, 8, 16, 16
    x = jax.random.normal(k_x, (N, C_in, H, W), jnp.float32)   # NCHW like PyTorch
    params = make_params(k_p, C_in, C_out)

    out = jax.block_until_ready(down_unit_forward(x, params))

    # sanity: shape + value check against a pure-JAX f32 reference
    assert out.shape == (N, C_out, H // 2, W // 2), out.shape
    ref = jax.block_until_ready(down_unit_reference(x, params))
    # bf16 operands at both stages (f32 accumulation) -> loose-ish tolerance.
    np.testing.assert_allclose(np.asarray(out), np.asarray(ref),
                               rtol=4e-2, atol=4e-2)

    print("KERNEL_OK")
</pallas_src>

<mosaic_0001>
module attributes {stable_mosaic.version = 11 : i64} {
  func.func @_stage1_kernel(%arg0: i32, %arg1: memref<64x100xbf16, #tpu.memory_space<vmem>>, %arg2: memref<100x128xbf16, #tpu.memory_space<vmem>>, %arg3: memref<1x128xf32, #tpu.memory_space<vmem>>, %arg4: memref<64x128xbf16, #tpu.memory_space<vmem>>) attributes {dimension_semantics = [#tpu.dimension_semantics<parallel>], iteration_bounds = array<i64: 2>, scalar_prefetch = 0 : i64, scratch_operands = 0 : i64, tpu.core_type = #tpu.core_type<tc>, window_params = [{transform_indices = @transform_0, window_bounds = array<i64: 64, 100>}, {pipeline_mode = #tpu.pipeline_mode<synchronous>, transform_indices = @transform_1, window_bounds = array<i64: 100, 128>}, {pipeline_mode = #tpu.pipeline_mode<synchronous>, transform_indices = @transform_2, window_bounds = array<i64: 1, 128>}, {transform_indices = @transform_3, window_bounds = array<i64: 64, 128>}]} {
    %c0 = arith.constant 0 : index
    %c0_0 = arith.constant 0 : index
    %0 = vector.load %arg1[%c0, %c0_0] : memref<64x100xbf16, #tpu.memory_space<vmem>>, vector<64x100xbf16>
    %c0_1 = arith.constant 0 : index
    %c0_2 = arith.constant 0 : index
    %1 = vector.load %arg2[%c0_1, %c0_2] : memref<100x128xbf16, #tpu.memory_space<vmem>>, vector<100x128xbf16>
    %cst = arith.constant dense<0.000000e+00> : vector<64x128xf32>
    %2 = tpu.matmul %0, %1, %cst {dimension_numbers = #tpu.dot_dimension_numbers<[1], [0], [0], [1], [0, 0, 1, 1], [], []>} : vector<64x100xbf16>, vector<100x128xbf16>, vector<64x128xf32> -> vector<64x128xf32>
    %c0_3 = arith.constant 0 : index
    %c0_4 = arith.constant 0 : index
    %3 = vector.load %arg3[%c0_3, %c0_4] : memref<1x128xf32, #tpu.memory_space<vmem>>, vector<1x128xf32>
    %4 = vector.broadcast %3 : vector<1x128xf32> to vector<64x128xf32>
    %5 = arith.addf %2, %4 : vector<64x128xf32>
    %6 = arith.truncf %5 : vector<64x128xf32> to vector<64x128xbf16>
    %c0_5 = arith.constant 0 : index
    %c0_6 = arith.constant 0 : index
    %7 = vector.load %arg4[%c0_5, %c0_6] : memref<64x128xbf16, #tpu.memory_space<vmem>>, vector<64x128xbf16>
    tpu.vector_store %arg4[%c0_5, %c0_6], %6 {strides = array<i32>} : memref<64x128xbf16, #tpu.memory_space<vmem>>, vector<64x128xbf16>,
    return
  }
  func.func @transform_0(%arg0: i32) -> (i32, i32) {
    %c0_i32 = arith.constant 0 : i32
    %c0_i32_0 = arith.constant 0 : i32
    return %arg0, %c0_i32 : i32, i32
  }
  func.func @transform_1(%arg0: i32) -> (i32, i32) {
    %c0_i32 = arith.constant 0 : i32
    %c0_i32_0 = arith.constant 0 : i32
    %c0_i32_1 = arith.constant 0 : i32
    return %c0_i32, %c0_i32_0 : i32, i32
  }
  func.func @transform_2(%arg0: i32) -> (i32, i32) {
    %c0_i32 = arith.constant 0 : i32
    %c0_i32_0 = arith.constant 0 : i32
    %c0_i32_1 = arith.constant 0 : i32
    return %c0_i32, %c0_i32_0 : i32, i32
  }
  func.func @transform_3(%arg0: i32) -> (i32, i32) {
    %c0_i32 = arith.constant 0 : i32
    %c0_i32_0 = arith.constant 0 : i32
    return %arg0, %c0_i32 : i32, i32
  }
}

module attributes {stable_mosaic.version = 11 : i64} {
  func.func @_fuse_conv_kernel(%arg0: i32, %arg1: i32, %arg2: i32, %arg3: memref<1x1x10x128xbf16, #tpu.memory_space<vmem>>, %arg4: memref<9x128x128xbf16, #tpu.memory_space<vmem>>, %arg5: memref<1x1x8x128xbf16, #tpu.memory_space<vmem>>, %arg6: memref<4x128xf32, #tpu.memory_space<vmem>>, %arg7: memref<1x1x8x128xf32, #tpu.memory_space<vmem>>, %arg8: memref<8x128xf32, #tpu.memory_space<vmem>>) attributes {dimension_semantics = [#tpu.dimension_semantics<parallel>, #tpu.dimension_semantics<parallel>, #tpu.dimension_semantics<arbitrary>], iteration_bounds = array<i64: 2, 8, 3>, scalar_prefetch = 0 : i64, scratch_operands = 1 : i64, tpu.core_type = #tpu.core_type<tc>, window_params = [{transform_indices = @transform_0, window_bounds = array<i64: 1, 1, 10, 128>}, {pipeline_mode = #tpu.pipeline_mode<synchronous>, transform_indices = @transform_1, window_bounds = array<i64: 9, 128, 128>}, {transform_indices = @transform_2, window_bounds = array<i64: 1, 1, 8, 128>}, {pipeline_mode = #tpu.pipeline_mode<synchronous>, transform_indices = @transform_3, window_bounds = array<i64: 4, 128>}, {transform_indices = @transform_4, window_bounds = array<i64: 1, 1, 8, 128>}]} {
    %c0_i32 = arith.constant 0 : i32
    %0 = arith.cmpi eq, %arg2, %c0_i32 : i32
    %1 = arith.extui %0 : i1 to i32
    %c0_i32_0 = arith.constant 0 : i32
    %2 = arith.cmpi ne, %1, %c0_i32_0 : i32
    scf.if %2 {
      %cst_22 = arith.constant 0.000000e+00 : f32
      %36 = vector.broadcast %cst_22 : f32 to vector<8x128xf32>
      %c0_23 = arith.constant 0 : index
      %c0_24 = arith.constant 0 : index
      %37 = vector.load %arg8[%c0_23, %c0_24] : memref<8x128xf32, #tpu.memory_space<vmem>>, vector<8x128xf32>
      tpu.vector_store %arg8[%c0_23, %c0_24], %36 {strides = array<i32>} : memref<8x128xf32, #tpu.memory_space<vmem>>, vector<8x128xf32>,
    } else {
    }
    %c0 = arith.constant 0 : index
    %c0_1 = arith.constant 0 : index
    %c0_2 = arith.constant 0 : index
    %c0_3 = arith.constant 0 : index
    %3 = vector.load %arg3[%c0, %c0_1, %c0_2, %c0_3] : memref<1x1x10x128xbf16, #tpu.memory_space<vmem>>, vector<1x1x10x128xbf16>
    %4 = vector.shape_cast %3 : vector<1x1x10x128xbf16> to vector<10x128xbf16>
    %cst = arith.constant 0.000000e+00 : f32
    %5 = vector.broadcast %cst : f32 to vector<8x128xf32>
    %6 = vector.extract_strided_slice %4 {offsets = [0, 0], sizes = [8, 128], strides = [1, 1]} : vector<10x128xbf16> to vector<8x128xbf16>
    %c3_i32 = arith.constant 3 : i32
    %7 = arith.muli %arg2, %c3_i32 : i32
    %c0_i32_4 = arith.constant 0 : i32
    %8 = arith.addi %7, %c0_i32_4 : i32
    %9 = arith.index_cast %8 : i32 to index
    %c0_5 = arith.constant 0 : index
    %c0_6 = arith.constant 0 : index
    %10 = vector.load %arg4[%9, %c0_5, %c0_6] : memref<9x128x128xbf16, #tpu.memory_space<vmem>>, vector<1x128x128xbf16>
    %11 = vector.shape_cast %10 : vector<1x128x128xbf16> to vector<128x128xbf16>
    %cst_7 = arith.constant dense<0.000000e+00> : vector<8x128xf32>
    %12 = tpu.matmul %6, %11, %cst_7 {dimension_numbers = #tpu.dot_dimension_numbers<[1], [0], [0], [1], [0, 0, 1, 1], [], []>} : vector<8x128xbf16>, vector<128x128xbf16>, vector<8x128xf32> -> vector<8x128xf32>
    %13 = arith.addf %5, %12 : vector<8x128xf32>
    %14 = vector.extract_strided_slice %4 {offsets = [1, 0], sizes = [8, 128], strides = [1, 1]} : vector<10x128xbf16> to vector<8x128xbf16>
    %c3_i32_8 = arith.constant 3 : i32
    %15 = arith.muli %arg2, %c3_i32_8 : i32
    %c1_i32 = arith.constant 1 : i32
    %16 = arith.addi %15, %c1_i32 : i32
    %17 = arith.index_cast %16 : i32 to index
    %c0_9 = arith.constant 0 : index
    %c0_10 = arith.constant 0 : index
    %18 = vector.load %arg4[%17, %c0_9, %c0_10] : memref<9x128x128xbf16, #tpu.memory_space<vmem>>, vector<1x128x128xbf16>
    %19 = vector.shape_cast %18 : vector<1x128x128xbf16> to vector<128x128xbf16>
    %cst_11 = arith.constant dense<0.000000e+00> : vector<8x128xf32>
    %20 = tpu.matmul %14, %19, %cst_11 {dimension_numbers = #tpu.dot_dimension_numbers<[1], [0], [0], [1], [0, 0, 1, 1], [], []>} : vector<8x128xbf16>, vector<128x128xbf16>, vector<8x128xf32> -> vector<8x128xf32>
    %21 = arith.addf %13, %20 : vector<8x128xf32>
    %22 = vector.extract_strided_slice %4 {offsets = [2, 0], sizes = [8, 128], strides = [1, 1]} : vector<10x128xbf16> to vector<8x128xbf16>
    %c3_i32_12 = arith.constant 3 : i32
    %23 = arith.muli %arg2, %c3_i32_12 : i32
    %c2_i32 = arith.constant 2 : i32
    %24 = arith.addi %23, %c2_i32 : i32
    %25 = arith.index_cast %24 : i32 to index
    %c0_13 = arith.constant 0 : index
    %c0_14 = arith.constant 0 : index
    %26 = vector.load %arg4[%25, %c0_13, %c0_14] : memref<9x128x128xbf16, #tpu.memory_space<vmem>>, vector<1x128x128xbf16>
    %27 = vector.shape_cast %26 : vector<1x128x128xbf16> to vector<128x128xbf16>
    %cst_15 = arith.constant dense<0.000000e+00> : vector<8x128xf32>
    %28 = tpu.matmul %22, %27, %cst_15 {dimension_numbers = #tpu.dot_dimension_numbers<[1], [0], [0], [1], [0, 0, 1, 1], [], []>} : vector<8x128xbf16>, vector<128x128xbf16>, vector<8x128xf32> -> vector<8x128xf32>
    %29 = arith.addf %21, %28 : vector<8x128xf32>
    %c0_16 = arith.constant 0 : index
    %c0_17 = arith.constant 0 : index
    %30 = vector.load %arg8[%c0_16, %c0_17] : memref<8x128xf32, #tpu.memory_space<vmem>>, vector<8x128xf32>
    %31 = arith.addf %30, %29 : vector<8x128xf32>
    %c0_18 = arith.constant 0 : index
    %c0_19 = arith.constant 0 : index
    %32 = vector.load %arg8[%c0_18, %c0_19] : memref<8x128xf32, #tpu.memory_space<vmem>>, vector<8x128xf32>
    tpu.vector_store %arg8[%c0_18, %c0_19], %31 {strides = array<i32>} : memref<8x128xf32, #tpu.memory_space<vmem>>, vector<8x128xf32>,
    %c2_i32_20 = arith.constant 2 : i32
    %33 = arith.cmpi eq, %arg2, %c2_i32_20 : i32
    %34 = arith.extui %33 : i1 to i32
    %c0_i32_21 = arith.constant 0 : i32
    %35 = arith.cmpi ne, %34, %c0_i32_21 : i32
    scf.if %35 {
      %c0_22 = arith.constant 0 : index
      %c0_23 = arith.constant 0 : index
      %36 = vector.load %arg6[%c0_22, %c0_23] : memref<4x128xf32, #tpu.memory_space<vmem>>, vector<4x128xf32>
      %37 = vector.extract_strided_slice %36 {offsets = [0, 0], sizes = [1, 128], strides = [1, 1]} : vector<4x128xf32> to vector<1x128xf32>
      %38 = vector.extract_strided_slice %36 {offsets = [1, 0], sizes = [1, 128], strides = [1, 1]} : vector<4x128xf32> to vector<1x128xf32>
      %39 = vector.extract_strided_slice %36 {offsets = [2, 0], sizes = [1, 128], strides = [1, 1]} : vector<4x128xf32> to vector<1x128xf32>
      %40 = vector.extract_strided_slice %36 {offsets = [3, 0], sizes = [1, 128], strides = [1, 1]} : vector<4x128xf32> to vector<1x128xf32>
      %c0_24 = arith.constant 0 : index
      %c0_25 = arith.constant 0 : index
      %c0_26 = arith.constant 0 : index
      %c0_27 = arith.constant 0 : index
      %41 = vector.load %arg5[%c0_24, %c0_25, %c0_26, %c0_27] : memref<1x1x8x128xbf16, #tpu.memory_space<vmem>>, vector<1x1x8x128xbf16>
      %42 = vector.shape_cast %41 : vector<1x1x8x128xbf16> to vector<8x128xbf16>
      %43 = arith.extf %42 : vector<8x128xbf16> to vector<8x128xf32>
      %c0_28 = arith.constant 0 : index
      %c0_29 = arith.constant 0 : index
      %44 = vector.load %arg8[%c0_28, %c0_29] : memref<8x128xf32, #tpu.memory_space<vmem>>, vector<8x128xf32>
      %45 = vector.broadcast %37 : vector<1x128xf32> to vector<8x128xf32>
      %46 = arith.mulf %44, %45 : vector<8x128xf32>
      %47 = vector.broadcast %38 : vector<1x128xf32> to vector<8x128xf32>
      %48 = arith.addf %46, %47 : vector<8x128xf32>
      %49 = vector.broadcast %39 : vector<1x128xf32> to vector<8x128xf32>
      %50 = arith.mulf %43, %49 : vector<8x128xf32>
      %51 = arith.addf %48, %50 : vector<8x128xf32>
      %52 = vector.broadcast %40 : vector<1x128xf32> to vector<8x128xf32>
      %53 = arith.addf %51, %52 : vector<8x128xf32>
      %cst_30 = arith.constant 0.000000e+00 : f32
      %54 = vector.broadcast %cst_30 : f32 to vector<8x128xf32>
      %55 = arith.maximumf %53, %54 : vector<8x128xf32>
      %56 = vector.shape_cast %55 : vector<8x128xf32> to vector<1x1x8x128xf32>
      %c0_31 = arith.constant 0 : index
      %c0_32 = arith.constant 0 : index
      %c0_33 = arith.constant 0 : index
      %c0_34 = arith.constant 0 : index
      %57 = vector.load %arg7[%c0_31, %c0_32, %c0_33, %c0_34] : memref<1x1x8x128xf32, #tpu.memory_space<vmem>>, vector<1x1x8x128xf32>
      tpu.vector_store %arg7[%c0_31, %c0_32, %c0_33, %c0_34], %56 {strides = array<i32>} : memref<1x1x8x128xf32, #tpu.memory_space<vmem>>, vector<1x1x8x128xf32>,
    } else {
    }
    return
  }
  func.func @transform_0(%arg0: i32, %arg1: i32, %arg2: i32) -> (i32, i32, i32, i32) {
    %0 = arith.addi %arg1, %arg2 : i32
    %c0_i32 = arith.constant 0 : i32
    %c0_i32_0 = arith.constant 0 : i32
    %c0_i32_1 = arith.constant 0 : i32
    return %arg0, %0, %c0_i32, %c0_i32_0 : i32, i32, i32, i32
  }
  func.func @transform_1(%arg0: i32, %arg1: i32, %arg2: i32) -> (i32, i32, i32) {
    %c0_i32 = arith.constant 0 : i32
    %c0_i32_0 = arith.constant 0 : i32
    %c0_i32_1 = arith.constant 0 : i32
    %c0_i32_2 = arith.constant 0 : i32
    return %c0_i32, %c0_i32_0, %c0_i32_1 : i32, i32, i32
  }
  func.func @transform_2(%arg0: i32, %arg1: i32, %arg2: i32) -> (i32, i32, i32, i32) {
    %c0_i32 = arith.constant 0 : i32
    %c0_i32_0 = arith.constant 0 : i32
    %c0_i32_1 = arith.constant 0 : i32
    return %arg0, %arg1, %c0_i32, %c0_i32_0 : i32, i32, i32, i32
  }
  func.func @transform_3(%arg0: i32, %arg1: i32, %arg2: i32) -> (i32, i32) {
    %c0_i32 = arith.constant 0 : i32
    %c0_i32_0 = arith.constant 0 : i32
    %c0_i32_1 = arith.constant 0 : i32
    return %c0_i32, %c0_i32_0 : i32, i32
  }
  func.func @transform_4(%arg0: i32, %arg1: i32, %arg2: i32) -> (i32, i32, i32, i32) {
    %c0_i32 = arith.constant 0 : i32
    %c0_i32_0 = arith.constant 0 : i32
    %c0_i32_1 = arith.constant 0 : i32
    return %arg0, %arg1, %c0_i32, %c0_i32_0 : i32, i32, i32, i32
  }
}

</mosaic_0001>

<bundles_post_ra>
// kernel: down_unit_forward.2
= control target key start
LH: loop header
LB: loop body
LE: loop exit
PB: predicated region body
PF: predicated region fallthrough
CT: control target
= control target key end

     0   :  { %s602_s12 = smov 0   ;;  %s654_s0 = inlined_call_operand.vmem [shape: bf16[128,100], index: 0, kind: input, shape index: {}]   ;;  %s655_s1 = inlined_call_operand.vmem [shape: bf16[100,128], index: 1, kind: input, shape index: {}]   ;;  %s656_s2 = inlined_call_operand.vmem [shape: f32[1,128], index: 2, kind: input, shape index: {}]   ;;  %s657_s3 = inlined_call_operand.vmem [shape: bf16[128,128], index: 3, kind: output, shape index: {}]  }
   0x1 LB: > { %s440_s13 = sadd.s32 4294967295, %s580_s12   ;;  %p444_p0 = scmp.ge.s32.totalorder %s580_s12, 1  ;;  %s580_s12 = sphi %s602_s12, %s13_s12  }
   0x2   : > { %p138_p1 = scmp.lt.s32.totalorder %s580_s12, 3 }
   0x4   : > { %p139_p2 = pnand %p444_p0, %p138_p1 }
   0x5   : > { %s445_s18 = sshll.u32 (!%p139_p2), %s440_s13, 3 }
   0x6   : > { %142 = sbr.rel (%p139_p2) target bundleno = 244 (0xf4), region = 32  ;;  %p163_p3 = scmp.lt.s32.totalorder (!%p139_p2), %s445_s18, 15 }
   0xb   : > { %v563_v0 = vld [vmem:[%s655_s1 + $0x30] ss:$0 sps:$4 sm:$0x33]   ;;  %vm275_vm0 = vcmask 1041408   ;;  %v564_v1 = vld [vmem:[%s655_s1 + $0x28] sm:$0xff]   ;;  %v565_v3 = vld [vmem:[%s655_s1 + $0x20] sm:$0xff]  }
   0xc   : > { %553 = vmatprep.subr.msk.bf16.mxu0 %vm275_vm0, %v563_v0  ;;  %554 = vmatprep.subr.msk.bf16.mxu1 %vm275_vm0, %v563_v0  ;;  %v277_v2 = vsel %vm275_vm0, %v563_v0, 0  ;;  %s659_s18 = smov (!%p163_p3, %s445_s18), 15  ;;  %v566_v4 = vld [vmem:[%s655_s1 + $0x18] sm:$0xff]   ;;  %vm262_vm1 = vcmask 818176   ;;  %v567_v7 = vld [vmem:[%s655_s1 + $0x10] sm:$0xff]   ;;  %v568_v8 = vld [vmem:[%s655_s1 + $0x8] sm:$0xff]  }
   0xd   : > { %518 = vmatpush3.bf16.msra.mxu0 %v277_v2  ;;  %546 = vmatpush3.bf16.msra.mxu1 %v277_v2  ;;  %s446_s21 = sshll.u32 %s659_s18, 2  ;;  %v569_v9 = vld [vmem:[%s655_s1] sm:$0xff]  }
   0xe   : > { %519 = vmatprep.subr.bf16.mxu0 %v564_v1  ;;  %540 = vmatprep.subr.bf16.mxu1 %v564_v1  ;;  %s166_s26 = scalar_lea.vmem %s654_s0, %s446_s21  ;;  %v449_v14 = vld [vmem:[%s656_s2] ss:$0 sm:$0xff]  ;;  %s172_s10 = scalar_lea.vmem %s657_s3, %s446_s21 }
   0xf   : > { %v570_v5 = vld [vmem:[%s166_s26] sm:$0xff]   ;;  %v571_v6 = vld [vmem:[%s166_s26 + $0x10] sm:$0xff]   ;;  %v572_v10 = vld [vmem:[%s166_s26 + $0x8] sm:$0xff]  }
  0x10   : > { %531 = vmatprep.mubr.msk.bf16.mxu0 %vm262_vm1, %v570_v5  ;;  %535 = vmatprep.mubr.msk.bf16.mxu1 %vm262_vm1, %v571_v6  ;;  %v573_v11 = vld [vmem:[%s166_s26 + $0x18] sm:$0xff]  }
  0x11   : > { %520 = vmatpush3.bf16.msra.mxu0 %v564_v1  ;;  %547 = vmatpush3.bf16.msra.mxu1 %v564_v1 }
  0x12   : > { %521 = vmatprep.subr.bf16.mxu0 %v565_v3  ;;  %541 = vmatprep.subr.bf16.mxu1 %v565_v3 }
  0x15   : > { %522 = vmatpush3.bf16.msra.mxu0 %v565_v3  ;;  %548 = vmatpush3.bf16.msra.mxu1 %v565_v3 }
  0x16   : > { %523 = vmatprep.subr.bf16.mxu0 %v566_v4  ;;  %542 = vmatprep.subr.bf16.mxu1 %v566_v4 }
  0x19   : > { %524 = vmatpush3.bf16.msra.mxu0 %v566_v4  ;;  %549 = vmatpush3.bf16.msra.mxu1 %v566_v4 }
  0x1a   : > { %525 = vmatprep.subr.bf16.mxu0 %v567_v7  ;;  %543 = vmatprep.subr.bf16.mxu1 %v567_v7 }
  0x1d   : > { %526 = vmatpush3.bf16.msra.mxu0 %v567_v7  ;;  %550 = vmatpush3.bf16.msra.mxu1 %v567_v7 }
  0x1e   : > { %527 = vmatprep.subr.bf16.mxu0 %v568_v8  ;;  %544 = vmatprep.subr.bf16.mxu1 %v568_v8 }
  0x21   : > { %528 = vmatpush3.bf16.msra.mxu0 %v568_v8  ;;  %551 = vmatpush3.bf16.msra.mxu1 %v568_v8 }
  0x22   : > { %529 = vmatprep.subr.bf16.mxu0 %v569_v9  ;;  %545 = vmatprep.subr.bf16.mxu1 %v569_v9 }
  0x25   : > { %530 = vmatpush3.bf16.msra.mxu0 %v569_v9  ;;  %552 = vmatpush3.bf16.msra.mxu1 %v569_v9 }
  0x28   : > { %532 = vmatmul.mubr.msk.bf16.vlgmr.msra.gmra.mxu0 %vm262_vm1, %v572_v10  ;;  %536 = vmatmul.mubr.msk.bf16.vlgmr.msra.gmra.mxu1 %vm262_vm1, %v573_v11 }
  0xe8   : > { %v533_v12 = vpop.f32.mrf.mxu0  ;;  %v537_v13 = vpop.f32.mrf.mxu1 }
  0xe9   : > { %v322_v19 = vadd.f32 %v533_v12, %v449_v14  ;;  %v338_v20 = vadd.f32 %v537_v13, %v449_v14 }
  0xea   : > { %v313_v15 = vpop.f32.mrf.mxu0  ;;  %v329_v16 = vpop.f32.mrf.mxu1 }
  0xeb   : > { %v314_v23 = vadd.f32 %v449_v14, %v313_v15  ;;  %v330_v24 = vadd.f32 %v449_v14, %v329_v16 }
  0xec   : > { %v534_v17 = vpop.f32.mrf.mxu0  ;;  %v538_v18 = vpop.f32.mrf.mxu1 }
  0xed   : > { %v325_v21 = vadd.f32 %v534_v17, %v449_v14  ;;  %v341_v22 = vadd.f32 %v538_v18, %v449_v14 }
  0xee   : > { %v316_v25 = vpop.f32.mrf.mxu0  ;;  %v332_v26 = vpop.f32.mrf.mxu1 }
  0xef   : > { %v491_v27 = vpack.c.bf16 %v325_v21, %v322_v19  ;;  %v501_v28 = vpack.c.bf16 %v341_v22, %v338_v20  ;;  %v317_v29 = vadd.f32 %v449_v14, %v316_v25  ;;  %v333_v30 = vadd.f32 %v449_v14, %v332_v26 }
  0xf1   : > { %503 = vst [vmem:[%s172_s10 + $0x8] sm:$0xff] %v491_v27   ;;  %505 = vst [vmem:[%s172_s10 + $0x18] sm:$0xff] %v501_v28   ;;  %v486_v31 = vpack.c.bf16 %v317_v29, %v314_v23  ;;  %v496_v32 = vpack.c.bf16 %v333_v30, %v330_v24 }
  0xf3   : > { %487 = vst [vmem:[%s172_s10] sm:$0xff] %v486_v31   ;;  %504 = vst [vmem:[%s172_s10 + $0x10] sm:$0xff] %v496_v32  }
  0xf4 PF: > { %s13_s12 = sadd.s32 1, %s580_s12  }
  0xf5   : > { %p10_p4 = scmp.ge.s32.totalorder %s13_s12, 4  }
  0xf7   :  { %12 = sbr.rel (!%p10_p4) target bundleno = 1 (0x1), region = 62 }

// kernel: down_unit_forward.3
= control target key start
LH: loop header
LB: loop body
LE: loop exit
PB: predicated region body
PF: predicated region fallthrough
CT: control target
= control target key end

     0   :  { %s1115_s15 = smov 0   ;;  %s1117_s16 = smov 0   ;;  %s1270_s0 = inlined_call_operand.vmem [shape: bf16[2,10,10,128], index: 0, kind: input, shape index: {}]   ;;  %s1271_s1 = inlined_call_operand.vmem [shape: bf16[9,128,128], index: 1, kind: input, shape index: {}]   ;;  %s1272_s2 = inlined_call_operand.vmem [shape: bf16[2,8,8,128], index: 2, kind: input, shape index: {}]   ;;  %s1273_s3 = inlined_call_operand.vmem [shape: f32[4,128], index: 3, kind: input, shape index: {}]   ;;  %s1274_s4 = inlined_call_operand.vmem [shape: f32[2,8,8,128], index: 4, kind: output, shape index: {}]  }
   0x1   :  { %s1119_s17 = smov 0   ;;  %s1121_s18 = smov 0  }
   0x2   :  { %s1123_s19 = smov 0   ;;  %s1125_s20 = smov 0  }
   0x3   :  { %s1127_s21 = smov 0  }
   0x4 LB: > { %s26_s22 = sadd.s32 1, %s1073_s18  ;;  %s29_s23 = sadd.s32 1, %s1077_s19  ;;  %s1085_s21 = sphi %s1127_s21, %s14_s21   ;;  %s1081_s20 = sphi %s1125_s20, %s1280_s20   ;;  %s1077_s19 = sphi %s1123_s19, %s1279_s19   ;;  %s1073_s18 = sphi %s1121_s18, %s1278_s18   ;;  %s1069_s17 = sphi %s1119_s17, %s1277_s17   ;;  %s1065_s16 = sphi %s1117_s16, %s1276_s16   ;;  %s1061_s15 = sphi %s1115_s15, %s1275_s15  }
   0x5   : > { %p27_p0 = scmp.ge.s32.totalorder %s26_s22, 3  ;;  %p786_p1 = scmp.ge.s32.totalorder %s1085_s21, 1 }
   0x6   : > { %p208_p2 = scmp.lt.s32.totalorder %s1085_s21, 49  ;;  %s33_s24 = sadd.s32 1, %s1081_s20 }
   0x7   : > { %s1282_s22 = smov (%p27_p0, %s26_s22), 0  ;;  %s1284_s23 = smov (!%p27_p0, %s29_s23), %s1077_s19 }
   0x8   : > { %p209_p3 = pnand %p786_p1, %p208_p2  ;;  %p31_p4 = scmp.ge.s32.totalorder %s1284_s23, 8 }
   0x9   : > { %s250_s25 = sadd.s32 (!%p209_p3), %s1061_s15, %s1065_s16  ;;  %p251_p6 = scmp.lt.s32.totalorder (!%p209_p3), %s1069_s17, 1 }
   0xa   : > { %s1286_s23 = smov (%p31_p4, %s1284_s23), 0  ;;  %s1288_s24 = smov (!%p31_p4, %s33_s24), %s1081_s20 }
   0xb   : > { %p35_p5 = scmp.ge.s32.totalorder %s1288_s24, 2  ;;  %212 = sbr.rel (%p209_p3) target bundleno = 315 (0x13b), region = 36 }
   0xc   : > { %p253_p7 = scmp.lt.s32.totalorder (!%p209_p3), %s250_s25, 9  ;;  %p263_p8 = scmp.lt.s32.totalorder (!%p209_p3), %s1065_s16, 7 }
   0xd   : > { %s1290_s24 = smov (%p35_p5, %s1288_s24), 0  ;;  %p793_p9 = scmp.ne.s32.totalorder (!%p209_p3), %s1061_s15, 0 }
  0x10   : > { %s1292_s17 = smov (!%p251_p6, %s1069_s17), 1  ;;  %s1294_s25 = smov (!%p253_p7, %s250_s25), 9 }
  0x11   : > { %s946_s26 = smul.u32 20, %s1292_s17  ;;  %s787_s27 = sshll.u32 %s1294_s25, 1 }
  0x12   : > { %s789_s7 = sshll.u32 %s1292_s17, 3  ;;  %s1296_s16 = smov (!%p263_p8, %s1065_s16), 7 }
  0x13   : > { %s257_s28 = sadd.s32 %s946_s26, %s787_s27  ;;  %s266_s8 = sadd.s32 %s789_s7, %s1296_s16 }
  0x14   : > { %s788_s29 = sshll.u32 %s257_s28, 2  ;;  %s790_s9 = sshll.u32 %s266_s8, 2 }
  0x15   : > { %s1167_s6 = scalar_lea.vmem %s1270_s0, %s788_s29  ;;  %s792_s10 = sshll.u32 %s266_s8, 3 }
  0x16   : > { %s1173_s13 = scalar_lea.vmem %s1272_s2, %s790_s9  ;;  %s1178_s26 = scalar_lea.vmem %s1274_s4, %s792_s10 }
  0x17   : > { %281 = sbr.rel (%p793_p9) target bundleno = 30 (0x1e), region = 40 }
  0x1c   : > { %v1087_v0 = vmov 0.0  }
  0x1d   : > { %282 = vst [vmem:[#allocation2] sm:$0xff] %v1087_v0 }
  0x1e PF: > { %s858_s16 = smul.u32 192, %s1061_s15  ;;  %v1088_v1 = vmov 0.0   ;;  %vm1089_vm0 = vmmov 0   ;;  %v283_v10 = vld [vmem:[%s1167_s6] sm:$0xf]  ;;  %p855_p10 = scmp.ne.s32.totalorder %s1061_s15, 2 }
  0x1f   : > { %886 = vmatprep.subr.bf16.mxu0 %v1088_v1  ;;  %906 = vmatprep.subr.bf16.mxu1 %v1088_v1  ;;  %v284_v11 = vld [vmem:[%s1167_s6 + $0x4] sm:$0x1] }
  0x20   : > { %s1187_s28 = scalar_lea.vmem %s1271_s1, %s858_s16  ;;  %902 = vmatprep.mubr.msk.bf16.mxu0 %vm1089_vm0, %v1088_v1  ;;  %922 = vmatprep.mubr.msk.bf16.mxu1 %vm1089_vm0, %v1088_v1  ;;  %v813_v14 = vcombine.low %v283_v10, %v284_v11 }
  0x21   : > { %v1006_v2 = vld [vmem:[%s1187_s28 + $0x78] sm:$0xff]   ;;  %v1008_v4 = vld [vmem:[%s1187_s28 + $0x70] sm:$0xff]   ;;  %v1010_v6 = vld [vmem:[%s1187_s28 + $0x68] sm:$0xff]  }
  0x22   : > { %v1007_v3 = vld [vmem:[%s1187_s28 + $0x38] sm:$0xff]   ;;  %887 = vmatpush3.bf16.msra.mxu0 %v1006_v2  ;;  %v1009_v5 = vld [vmem:[%s1187_s28 + $0x30] sm:$0xff]   ;;  %v1011_v7 = vld [vmem:[%s1187_s28 + $0x28] sm:$0xff]   ;;  %v333_v17 = vshll.u32 %v813_v14, 16  ;;  %v331_v20 = vshrl.u32 %v813_v14, 16  ;;  %v534_v33 = vrot.slane %v813_v14, 1 }
  0x23   : > { %907 = vmatpush3.bf16.msra.mxu1 %v1007_v3  ;;  %888 = vmatprep.subr.bf16.mxu0 %v1088_v1  ;;  %v1012_v8 = vld [vmem:[%s1187_s28 + $0x60] sm:$0xff]   ;;  %v1014_v12 = vld [vmem:[%s1187_s28 + $0x58] sm:$0xff]   ;;  %v1016_v15 = vld [vmem:[%s1187_s28 + $0x50] sm:$0xff]  }
  0x24   : > { %908 = vmatprep.subr.bf16.mxu1 %v1088_v1  ;;  %v1013_v9 = vld [vmem:[%s1187_s28 + $0x20] sm:$0xff]   ;;  %v1015_v13 = vld [vmem:[%s1187_s28 + $0x18] sm:$0xff]   ;;  %v1017_v16 = vld [vmem:[%s1187_s28 + $0x10] sm:$0xff]   ;;  %v335_v21 = vrot.slane %v333_v17, 1 }
  0x25   : > { %v1018_v18 = vld [vmem:[%s1187_s28 + $0x48] sm:$0xff]   ;;  %v1020_v22 = vld [vmem:[%s1187_s28 + $0x40] sm:$0xff]   ;;  %v1023_v25 = vld [vmem:[%s1187_s28 + $0xb8] sm:$0xff]  }
  0x26   : > { %889 = vmatpush3.bf16.msra.mxu0 %v1008_v4  ;;  %v1019_v19 = vld [vmem:[%s1187_s28 + $0x8] sm:$0xff]   ;;  %v1021_v23 = vld [vmem:[%s1187_s28] sm:$0xff]   ;;  %v336_v24 = vor.u32 %v335_v21, %v331_v20  ;;  %v1024_v26 = vld [vmem:[%s1187_s28 + $0xb0] sm:$0xff]  }
  0x27   : > { %909 = vmatpush3.bf16.msra.mxu1 %v1009_v5  ;;  %890 = vmatprep.subr.bf16.mxu0 %v1088_v1  ;;  %v1025_v27 = vld [vmem:[%s1187_s28 + $0xa8] sm:$0xff]   ;;  %v1026_v28 = vld [vmem:[%s1187_s28 + $0xa0] sm:$0xff]   ;;  %v1027_v29 = vld [vmem:[%s1187_s28 + $0x98] sm:$0xff]  }
  0x28   : > { %910 = vmatprep.subr.bf16.mxu1 %v1088_v1  ;;  %v1028_v30 = vld [vmem:[%s1187_s28 + $0x90] sm:$0xff]   ;;  %v1029_v31 = vld [vmem:[%s1187_s28 + $0x88] sm:$0xff]   ;;  %v1030_v32 = vld [vmem:[%s1187_s28 + $0x80] sm:$0xff]  }
  0x29   : > { %v625_v44 = vld [vmem:[#allocation2] sm:$0xff] }
  0x2a   : > { %891 = vmatpush3.bf16.msra.mxu0 %v1010_v6 }
  0x2b   : > { %911 = vmatpush3.bf16.msra.mxu1 %v1011_v7  ;;  %892 = vmatprep.subr.bf16.mxu0 %v1088_v1 }
  0x2c   : > { %912 = vmatprep.subr.bf16.mxu1 %v1088_v1 }
  0x2e   : > { %893 = vmatpush3.bf16.msra.mxu0 %v1012_v8 }
  0x2f   : > { %913 = vmatpush3.bf16.msra.mxu1 %v1013_v9  ;;  %894 = vmatprep.subr.bf16.mxu0 %v1088_v1 }
  0x30   : > { %914 = vmatprep.subr.bf16.mxu1 %v1088_v1 }
  0x32   : > { %895 = vmatpush3.bf16.msra.mxu0 %v1014_v12 }
  0x33   : > { %915 = vmatpush3.bf16.msra.mxu1 %v1015_v13  ;;  %896 = vmatprep.subr.bf16.mxu0 %v1088_v1 }
  0x34   : > { %916 = vmatprep.subr.bf16.mxu1 %v1088_v1 }
  0x36   : > { %897 = vmatpush3.bf16.msra.mxu0 %v1016_v15 }
  0x37   : > { %917 = vmatpush3.bf16.msra.mxu1 %v1017_v16  ;;  %898 = vmatprep.subr.bf16.mxu0 %v1088_v1 }
  0x38   : > { %918 = vmatprep.subr.bf16.mxu1 %v1088_v1 }
  0x3a   : > { %899 = vmatpush3.bf16.msra.mxu0 %v1018_v18 }
  0x3b   : > { %919 = vmatpush3.bf16.msra.mxu1 %v1019_v19  ;;  %900 = vmatprep.subr.bf16.mxu0 %v1088_v1 }
  0x3c   : > { %920 = vmatprep.subr.bf16.mxu1 %v1088_v1 }
  0x3e   : > { %901 = vmatpush3.bf16.msra.mxu0 %v1020_v22 }
  0x3f   : > { %921 = vmatpush3.bf16.msra.mxu1 %v1021_v23  ;;  %926 = vmatprep.subr.bf16.mxu0 %v1088_v1 }
  0x41   : > { %903 = vmatmul.mubr.bf16.vlgmr.msra.gmra.mxu0 %v336_v24 }
  0x42   : > { %923 = vmatmul.mubr.bf16.vlgmr.msra.gmra.mxu1 %v283_v10  ;;  %927 = vmatpush3.bf16.msra.mxu0 %v1023_v25 }
  0x43   : > { %928 = vmatprep.subr.bf16.mxu0 %v1088_v1  ;;  %942 = vmatprep.mubr.msk.bf16.mxu0 %vm1089_vm0, %v1088_v1 }
  0x46   : > { %929 = vmatpush3.bf16.msra.mxu0 %v1024_v26 }
  0x47   : > { %930 = vmatprep.subr.bf16.mxu0 %v1088_v1 }
  0x4a   : > { %931 = vmatpush3.bf16.msra.mxu0 %v1025_v27 }
  0x4b   : > { %932 = vmatprep.subr.bf16.mxu0 %v1088_v1 }
  0x4e   : > { %933 = vmatpush3.bf16.msra.mxu0 %v1026_v28 }
  0x4f   : > { %934 = vmatprep.subr.bf16.mxu0 %v1088_v1 }
  0x52   : > { %935 = vmatpush3.bf16.msra.mxu0 %v1027_v29 }
  0x53   : > { %936 = vmatprep.subr.bf16.mxu0 %v1088_v1 }
  0x56   : > { %937 = vmatpush3.bf16.msra.mxu0 %v1028_v30 }
  0x57   : > { %938 = vmatprep.subr.bf16.mxu0 %v1088_v1 }
  0x5a   : > { %939 = vmatpush3.bf16.msra.mxu0 %v1029_v31 }
  0x5b   : > { %940 = vmatprep.subr.bf16.mxu0 %v1088_v1 }
  0x5e   : > { %941 = vmatpush3.bf16.msra.mxu0 %v1030_v32 }
  0x61   : > { %943 = vmatmul.mubr.bf16.vlgmr.msra.gmra.mxu0 %v534_v33 }
 0x101   : > { %v420_v34 = vpop.f32.mrf.mxu0 }
 0x102   : > { %v508_v35 = vpop.f32.mrf.mxu1 }
 0x103   : > { %v904_v36 = vpop.f32.mrf.mxu0  ;;  %v509_v42 = vadd.f32 %v508_v35, %v420_v34 }
 0x104   : > { %v924_v37 = vpop.f32.mrf.mxu1 }
 0x105   : > { %v423_v38 = vpop.f32.mrf.mxu0 }
 0x106   : > { %v511_v39 = vpop.f32.mrf.mxu1 }
 0x107   : > { %v905_v40 = vpop.f32.mrf.mxu0 }
 0x108   : > { %v925_v41 = vpop.f32.mrf.mxu1 }
 0x121   : > { %v618_v43 = vpop.f32.mrf.mxu0 }
 0x122   : > { %v624_v45 = vadd.f32 %v618_v43, %v509_v42 }
 0x123   : > { %v944_v46 = vpop.f32.mrf.mxu0  ;;  %631 = sbr.rel (%p855_p10) target bundleno = 315 (0x13b), region = 44 }
 0x124   : > { %v626_v47 = vadd.f32 %v625_v44, %v624_v45 }
 0x125   : > { %v621_v48 = vpop.f32.mrf.mxu0 }
 0x126   : > { %627 = vst [vmem:[#allocation2] sm:$0xff] %v626_v47 }
 0x127   : > { %v945_v49 = vpop.f32.mrf.mxu0 }
 0x128   : > { %v636_v50 = vlaneseq  ;;  %v633_v51 = vld [vmem:[%s1173_s13] sm:$0xf] }
 0x129   : > { %v632_v53 = vld [vmem:[%s1273_s3] sm:$0xf]  ;;  %v634_v54 = vunpack.c.l.bf16 %v633_v51 }
 0x12a   : > { %v637_v52 = vshrl.u32 %v636_v50, 7 }
 0x12c   : > { %v638_v55 = vsub.s32 0, %v637_v52  ;;  %v643_v56 = vsub.s32 1, %v637_v52  ;;  %v648_v57 = vsub.s32 2, %v637_v52  ;;  %v654_v62 = vsub.s32 3, %v637_v52 }
 0x12d   : > { %v635_v58 = vld [vmem:[#allocation2] sm:$0xff] }
 0x12e   : > { %v639_v59 = vrot.slane %v632_v53, %v638_v55  ;;  %v644_v60 = vrot.slane %v632_v53, %v643_v56  ;;  %v649_v61 = vrot.slane %v632_v53, %v648_v57  ;;  %v655_v2 = vrot.slane %v632_v53, %v654_v62 }
 0x130   : > { %v640_v63 = vmul.f32 %v639_v59, %v635_v58  ;;  %v650_v0 = vmul.f32 %v649_v61, %v634_v54 }
 0x132   : > { %v645_v1 = vadd.f32 %v644_v60, %v640_v63 }
 0x134   : > { %v651_v3 = vadd.f32 %v650_v0, %v645_v1 }
 0x136   : > { %v656_v4 = vadd.f32 %v655_v2, %v651_v3 }
 0x138   : > { %v657_v5 = vmax.f32 %v656_v4, 0.0 }
 0x13a   : > { %658 = vst [vmem:[%s1178_s26] sm:$0xff] %v657_v5 }
 0x13b PF: > { %s14_s21 = sadd.s32 1, %s1085_s21   ;;  %s1275_s15 = smov %s1073_s18 }
 0x13c   : > { %p11_p11 = scmp.ge.s32.totalorder %s14_s21, 50   ;;  %s1276_s16 = smov %s1077_s19 }
 0x13d   : > { %s1277_s17 = smov %s1081_s20  ;;  %s1278_s18 = smov %s1282_s22 }
 0x13e   : > { %s1279_s19 = smov %s1286_s23  ;;  %s1280_s20 = smov %s1290_s24 }
 0x13f   :  { %13 = sbr.rel (!%p11_p11) target bundleno = 4 (0x4), region = 80 }

</bundles_post_ra>
